<compile_context>
chip_gen: v7x
topology: tpu7x:2x2x1
jax: 0.10.0
libtpu: 0.0.40
codegen_flags: <defaults>
</compile_context>

<pallas_src>
import functools

import jax
import jax.numpy as jnp
from jax.experimental import pallas as pl
from jax.experimental.pallas import tpu as pltpu

_LANES = 128
_SUBLANES = 8
_DEFAULT_TILE_ROWS = 8192          # 8192 * 128 * 4 B = 4 MiB per f32 input tile
_MIN_PALLAS_ELEMS = 1 << 15        # below this, launch overhead dominates


def _cdiv(a, b):
    return -(-a // b)


def _round_up(a, b):
    return _cdiv(a, b) * b


def _rfmse_partial_kernel(pred_ref, targ_ref, out_ref, *, n_cols, tile_rows):
    """Per-tile weighted sum of squared differences.

    pred_ref, targ_ref : (tile_rows, 128) tiles of the flattened inputs (VMEM)
    out_ref            : (8, 128) f32 tile; the partial sum is written at [0,0]
    """
    # In-kernel upcast (keeps HBM traffic at the input dtype's width).
    d = pred_ref[...].astype(jnp.float32) - targ_ref[...].astype(jnp.float32)
    d2 = d * d

    # Column index of every element in the original (B, N) array.  Zero-padded
    # tail elements have d == 0, so their (irrelevant) weight contributes 0.
    base = pl.program_id(0) * (tile_rows * _LANES)
    sub = jax.lax.broadcasted_iota(jnp.int32, (tile_rows, _LANES), 0)
    lane = jax.lax.broadcasted_iota(jnp.int32, (tile_rows, _LANES), 1)
    flat = base + sub * _LANES + lane
    if (n_cols & (n_cols - 1)) == 0:
        col = jnp.bitwise_and(flat, n_cols - 1)      # power-of-two fast path
    else:
        col = jnp.remainder(flat, n_cols)            # general modular iota

    # Weight 2 on columns 0 and 1  <=>  add their squared diff a second time.
    extra = jnp.where(col < 2, d2, jnp.float32(0.0))
    partial = jnp.sum(d2) + jnp.sum(extra)

    # Lane-dense per-tile output slab: partial at [0, 0], zeros elsewhere.
    osub = jax.lax.broadcasted_iota(jnp.int32, (_SUBLANES, _LANES), 0)
    olane = jax.lax.broadcasted_iota(jnp.int32, (_SUBLANES, _LANES), 1)
    out_ref[...] = jnp.where((osub == 0) & (olane == 0), partial, jnp.float32(0.0))


def _rfmse_pallas(preds, targs, res_char, *, tile_rows=None):
    B, N = preds.shape
    total = B * N

    rows = max(_cdiv(total, _LANES), 1)
    if tile_rows is None:
        tile_rows = min(_DEFAULT_TILE_ROWS, _round_up(rows, _SUBLANES))
    tile_rows = _round_up(int(tile_rows), _SUBLANES)
    num_tiles = _cdiv(rows, tile_rows)
    padded_rows = num_tiles * tile_rows
    padded = padded_rows * _LANES

    def _flatten(x):
        x = x.reshape(-1)
        if padded != total:
            # Zero padding -> zero diff -> zero contribution to the loss.
            # (For production sizes, make B*N a multiple of tile_rows*128 so
            # this pad — an extra HBM copy — disappears and reshape is free.)
            x = jnp.pad(x, (0, padded - total))
        return x.reshape(padded_rows, _LANES)

    p2 = _flatten(preds)
    t2 = _flatten(targs)

    kernel = functools.partial(_rfmse_partial_kernel, n_cols=N, tile_rows=tile_rows)

    partials = pl.pallas_call(
        kernel,
        out_shape=jax.ShapeDtypeStruct((num_tiles * _SUBLANES, _LANES), jnp.float32),
        grid_spec=pltpu.PrefetchScalarGridSpec(
            num_scalar_prefetch=0,
            grid=(num_tiles,),
            in_specs=[
                pl.BlockSpec((tile_rows, _LANES), lambda i: (i, 0)),
                pl.BlockSpec((tile_rows, _LANES), lambda i: (i, 0)),
            ],
            out_specs=pl.BlockSpec((_SUBLANES, _LANES), lambda i: (i, 0)),
        ),
        compiler_params=pltpu.CompilerParams(
            dimension_semantics=("parallel",),     # lets v7x shard tiles on 2 TCs
            vmem_limit_bytes=32 * 1024 * 1024,     # safe on v5e/v6e/v7x
        ),
    )(p2, t2)

    scale = jnp.float32(float(res_char) ** 2 / float(B * (N + 2)))
    return jnp.sum(partials) * scale


def _rfmse_jnp(preds, targs, res_char):
    """Plain-jnp path for tiny inputs (same algebra as the kernel)."""
    B, N = preds.shape
    d = preds.astype(jnp.float32) - targs.astype(jnp.float32)
    d2 = d * d
    s = jnp.sum(d2) + jnp.sum(d2[:, :2])
    return s * jnp.float32(float(res_char) ** 2 / float(B * (N + 2)))


def rfmse_loss(preds, targs, res_char, *, tile_rows=None, force_pallas=False):
    """MSE over the per-row [L0, L0, L1, L1, *L2] expansion of preds/targets."""
    assert preds.shape == targs.shape and preds.ndim == 2
    B, N = preds.shape
    assert N >= 2, "each prediction vector must have at least 2 entries"
    if not force_pallas and B * N < _MIN_PALLAS_ELEMS:
        # A pallas_call for a handful of floats is pure launch/DMA overhead.
        return _rfmse_jnp(preds, targs, res_char)
    return _rfmse_pallas(preds, targs, res_char, tile_rows=tile_rows)


def _reference_loss(preds, targs, res_char):
    """Pure-JAX mirror of the PyTorch forward (duplicate L0, L1, then MSE)."""
    def expand(x):
        v = x.astype(jnp.float32) * res_char
        return jnp.concatenate(
            [v[:, 0:1], v[:, 0:1], v[:, 1:2], v[:, 1:2], v[:, 2:]], axis=1
        ).reshape(-1)

    p = expand(preds)
    t = expand(targs)
    return jnp.mean(jnp.square(p - t))


if __name__ == "__main__":
    res_char = 0.5  # config['dataset']['res_char'] (deterministic synthetic value)
    key = jax.random.PRNGKey(0)
    k1, k2, k3, k4, k5, k6 = jax.random.split(key, 6)

    # --- Test 1: module-scale shapes (B=2 prediction vectors of length 8). ---
    B, N = 2, 8
    p = jax.random.normal(k1, (B, N), dtype=jnp.float32)
    t = jax.random.normal(k2, (B, N), dtype=jnp.float32)
    loss = jax.block_until_ready(rfmse_loss(p, t, res_char, force_pallas=True))
    ref = jax.block_until_ready(_reference_loss(p, t, res_char))
    assert jnp.allclose(loss, ref, rtol=1e-5, atol=1e-6), (loss, ref)

    # --- Test 2: multi-tile grid + padding path (small tile to exercise it). ---
    B, N = 10, 256
    p = jax.random.normal(k3, (B, N), dtype=jnp.float32)
    t = jax.random.normal(k4, (B, N), dtype=jnp.float32)
    loss = jax.block_until_ready(
        rfmse_loss(p, t, res_char, force_pallas=True, tile_rows=8))
    ref = jax.block_until_ready(_reference_loss(p, t, res_char))
    assert jnp.allclose(loss, ref, rtol=1e-5, atol=1e-6), (loss, ref)

    # --- Test 3: bf16 inputs, upcast inside the kernel (no wrapper f32 copies). ---
    B, N = 4, 32
    p = jax.random.normal(k5, (B, N), dtype=jnp.float32).astype(jnp.bfloat16)
    t = jax.random.normal(k6, (B, N), dtype=jnp.float32).astype(jnp.bfloat16)
    loss = jax.block_until_ready(rfmse_loss(p, t, res_char, force_pallas=True))
    ref = jax.block_until_ready(_reference_loss(p, t, res_char))
    assert jnp.allclose(loss, ref, rtol=1e-4, atol=1e-6), (loss, ref)

    print("KERNEL_OK")
</pallas_src>

<mosaic_0001>
module attributes {stable_mosaic.version = 11 : i64} {
  func.func @_rfmse_partial_kernel(%arg0: i32, %arg1: memref<8x128xf32, #tpu.memory_space<vmem>>, %arg2: memref<8x128xf32, #tpu.memory_space<vmem>>, %arg3: memref<8x128xf32, #tpu.memory_space<vmem>>) attributes {dimension_semantics = [#tpu.dimension_semantics<parallel>], iteration_bounds = array<i64: 1>, scalar_prefetch = 0 : i64, scratch_operands = 0 : i64, tpu.core_type = #tpu.core_type<tc>, window_params = [{transform_indices = @transform_0, window_bounds = array<i64: 8, 128>}, {transform_indices = @transform_1, window_bounds = array<i64: 8, 128>}, {transform_indices = @transform_2, window_bounds = array<i64: 8, 128>}]} {
    %c0 = arith.constant 0 : index
    %c0_0 = arith.constant 0 : index
    %0 = vector.load %arg1[%c0, %c0_0] : memref<8x128xf32, #tpu.memory_space<vmem>>, vector<8x128xf32>
    %c0_1 = arith.constant 0 : index
    %c0_2 = arith.constant 0 : index
    %1 = vector.load %arg2[%c0_1, %c0_2] : memref<8x128xf32, #tpu.memory_space<vmem>>, vector<8x128xf32>
    %2 = arith.subf %0, %1 : vector<8x128xf32>
    %3 = arith.mulf %2, %2 : vector<8x128xf32>
    %c1024_i32 = arith.constant 1024 : i32
    %4 = arith.muli %arg0, %c1024_i32 : i32
    %5 = tpu.iota {dimensions = array<i32: 0>} : vector<8x128xi32>
    %6 = tpu.iota {dimensions = array<i32: 1>} : vector<8x128xi32>
    %c128_i32 = arith.constant 128 : i32
    %7 = vector.broadcast %c128_i32 : i32 to vector<8x128xi32>
    %8 = arith.muli %5, %7 : vector<8x128xi32>
    %9 = vector.broadcast %4 : i32 to vector<8x128xi32>
    %10 = arith.addi %9, %8 : vector<8x128xi32>
    %11 = arith.addi %10, %6 : vector<8x128xi32>
    %c7_i32 = arith.constant 7 : i32
    %12 = vector.broadcast %c7_i32 : i32 to vector<8x128xi32>
    %13 = arith.andi %11, %12 : vector<8x128xi32>
    %c2_i32 = arith.constant 2 : i32
    %14 = vector.broadcast %c2_i32 : i32 to vector<8x128xi32>
    %15 = arith.cmpi slt, %13, %14 : vector<8x128xi32>
    %cst = arith.constant 0.000000e+00 : f32
    %16 = vector.broadcast %cst : f32 to vector<8x128xf32>
    %17 = arith.select %15, %3, %16 : vector<8x128xi1>, vector<8x128xf32>
    %18 = vector.shape_cast %3 : vector<8x128xf32> to vector<1x8x128xf32>
    %cst_3 = arith.constant dense<0.000000e+00> : vector<1xf32>
    %19 = vector.multi_reduction <add>, %18, %cst_3 [1, 2] : vector<1x8x128xf32> to vector<1xf32>
    %20 = vector.shape_cast %19 : vector<1xf32> to vector<1x1x1xf32>
    %21 = vector.extract %20[0, 0, 0] : f32 from vector<1x1x1xf32>
    %22 = vector.shape_cast %17 : vector<8x128xf32> to vector<1x8x128xf32>
    %cst_4 = arith.constant dense<0.000000e+00> : vector<1xf32>
    %23 = vector.multi_reduction <add>, %22, %cst_4 [1, 2] : vector<1x8x128xf32> to vector<1xf32>
    %24 = vector.shape_cast %23 : vector<1xf32> to vector<1x1x1xf32>
    %25 = vector.extract %24[0, 0, 0] : f32 from vector<1x1x1xf32>
    %26 = arith.addf %21, %25 : f32
    %27 = tpu.iota {dimensions = array<i32: 0>} : vector<8x128xi32>
    %28 = tpu.iota {dimensions = array<i32: 1>} : vector<8x128xi32>
    %c0_i32 = arith.constant 0 : i32
    %29 = vector.broadcast %c0_i32 : i32 to vector<8x128xi32>
    %30 = arith.cmpi eq, %27, %29 : vector<8x128xi32>
    %c0_i32_5 = arith.constant 0 : i32
    %31 = vector.broadcast %c0_i32_5 : i32 to vector<8x128xi32>
    %32 = arith.cmpi eq, %28, %31 : vector<8x128xi32>
    %33 = arith.andi %30, %32 : vector<8x128xi1>
    %cst_6 = arith.constant 0.000000e+00 : f32
    %34 = vector.broadcast %26 : f32 to vector<8x128xf32>
    %35 = vector.broadcast %cst_6 : f32 to vector<8x128xf32>
    %36 = arith.select %33, %34, %35 : vector<8x128xi1>, vector<8x128xf32>
    %c0_7 = arith.constant 0 : index
    %c0_8 = arith.constant 0 : index
    %37 = vector.load %arg3[%c0_7, %c0_8] : memref<8x128xf32, #tpu.memory_space<vmem>>, vector<8x128xf32>
    tpu.vector_store %arg3[%c0_7, %c0_8], %36 {strides = array<i32>} : memref<8x128xf32, #tpu.memory_space<vmem>>, vector<8x128xf32>,
    return
  }
  func.func @transform_0(%arg0: i32) -> (i32, i32) {
    %c0_i32 = arith.constant 0 : i32
    %c0_i32_0 = arith.constant 0 : i32
    return %arg0, %c0_i32 : i32, i32
  }
  func.func @transform_1(%arg0: i32) -> (i32, i32) {
    %c0_i32 = arith.constant 0 : i32
    %c0_i32_0 = arith.constant 0 : i32
    return %arg0, %c0_i32 : i32, i32
  }
  func.func @transform_2(%arg0: i32) -> (i32, i32) {
    %c0_i32 = arith.constant 0 : i32
    %c0_i32_0 = arith.constant 0 : i32
    return %arg0, %c0_i32 : i32, i32
  }
}

</mosaic_0001>

<bundles_post_ra>
// kernel: tpu_custom_call.1
= control target key start
LH: loop header
LB: loop body
LE: loop exit
PB: predicated region body
PF: predicated region fallthrough
CT: control target
= control target key end

     0   :  { %7 = vsyncpa [#allocation3], 0  ;;  %s226_s0 = inlined_call_operand.hbm [shape: f32[8,128], index: 0, kind: input, shape index: {}]   ;;  %s227_s1 = inlined_call_operand.hbm [shape: f32[8,128], index: 1, kind: input, shape index: {}]   ;;  %s228_s2 = inlined_call_operand.hbm [shape: f32[8,128], index: 2, kind: output, shape index: {}]  }
   0x1   :  { %8 = vsyncpa [#allocation6], 0 }
   0x2   :  { %9 = vsyncpa [#allocation4], 0  ;;  %s172_s9 = smov [#allocation2]   ;;  %s173_s11 = smov [#allocation5]  }
   0x3   :  { %s16_s10 = sshll.u32 %s172_s9, 4  ;;  %s26_s12 = sshll.u32 %s173_s11, 4  ;;  %s17_s10 = int_to_ptr.vmem [resolvable:$true] %s16_s10  ;;  %s27_s12 = int_to_ptr.vmem [resolvable:$true] %s26_s12 }
   0x4   :  { %s100_s15 = scalar_lea.hbm %s226_s0, 128 }
   0x5   :  { %p101_p0 = scmp.ne.s32.totalorder %s226_s0, %s100_s15  ;;  %p104_p1 = scmp.lt.u32.totalorder %s100_s15, %s226_s0 }
   0x7   :  { %p106_p2 = pnand %p104_p1, %p101_p0 }
   0x9   :  { %109 = shalt.err (!%p106_p2)
}
   0xa   :  { %s110_s20 = scalar_lea.vmem %s17_s10, 128  ;;  %p115_p4 = scmp.lt.s32.totalorder %s17_s10, %s17_s10 }
   0xb   :  { %p111_p3 = scmp.ne.s32.totalorder %s17_s10, %s110_s20  ;;  %p116_p5 = scmp.lt.s32.totalorder %s110_s20, %s110_s20 }
   0xd   :  { %p117_p6 = por %p116_p5, %p115_p4 }
   0xf   :  { %p118_p7 = pnand %p117_p6, %p111_p3 }
  0x11   :  { %121 = shalt.err (!%p118_p7)
}
  0x12   :  { %19 = dma.hbm_to_vmem [thread:$0]  %s226_s0, 128, %s17_s10, [#allocation3]  }
  0x13   :  { %s122_s25 = scalar_lea.hbm %s227_s1, 128 }
  0x14   :  { %p123_p8 = scmp.ne.s32.totalorder %s227_s1, %s122_s25  ;;  %p126_p9 = scmp.lt.u32.totalorder %s122_s25, %s227_s1 }
  0x16   :  { %p128_p10 = pnand %p126_p9, %p123_p8 }
  0x18   :  { %131 = shalt.err (!%p128_p10)
}
  0x19   :  { %s132_s30 = scalar_lea.vmem %s27_s12, 128  ;;  %p137_p12 = scmp.lt.s32.totalorder %s27_s12, %s27_s12 }
  0x1a   :  { %p133_p11 = scmp.ne.s32.totalorder %s27_s12, %s132_s30  ;;  %p138_p13 = scmp.lt.s32.totalorder %s132_s30, %s132_s30 }
  0x1c   :  { %p139_p0 = por %p138_p13, %p137_p12 }
  0x1e   :  { %p140_p1 = pnand %p139_p0, %p133_p11 }
  0x20   :  { %143 = shalt.err (!%p140_p1)
}
  0x21   :  { %29 = dma.hbm_to_vmem [thread:$0]  %s227_s1, 128, %s27_s12, [#allocation6]  }
  0x22   :  { %166 = dma.done.wait [#allocation3], 128  }
  0x23   :  { %167 = vsyncadd [#allocation3], 4294967168 }
  0x24   :  { %168 = dma.done.wait [#allocation6], 128  }
  0x25   :  { %169 = vsyncadd [#allocation6], 4294967168  ;;  %v41_v0 = vlaneseq  ;;  %v36_v5 = vld [vmem:[#allocation2] sm:$0xff]  ;;  %v37_v6 = vld [vmem:[#allocation5] sm:$0xff]  ;;  %s174_s5 = smov [#allocation7]  }
  0x26   :  { %v38_v7 = vsub.f32 %v36_v5, %v37_v6  ;;  %s83_s6 = sshll.u32 %s174_s5, 4  ;;  %s84_s6 = int_to_ptr.vmem [resolvable:$true] %s83_s6 }
  0x27   :  { %v42_v1 = vshrl.u32 %v41_v0, 7  ;;  %v44_v2 = vand.u32 127, %v41_v0  ;;  %s144_s8 = scalar_lea.vmem %s84_s6, 128  ;;  %p149_p3 = scmp.lt.s32.totalorder %s84_s6, %s84_s6 }
  0x28   :  { %v39_v9 = vmul.f32 %v38_v7, %v38_v7  ;;  %p145_p2 = scmp.ne.s32.totalorder %s84_s6, %s144_s8  ;;  %p150_p4 = scmp.lt.s32.totalorder %s144_s8, %s144_s8 }
  0x29   :  { %v45_v3 = vmul.u32 128, %v42_v1  ;;  %vm71_vm1 = vcmp.eq.s32.totalorder %v42_v1, 0  ;;  %vm72_vm2 = vcmp.eq.s32.totalorder %v44_v2, 0 }
  0x2a   :  { %52 = vadd.xlane.f32.xlu0 %v39_v9  ;;  %vm73_vm3 = vmand %vm71_vm1, %vm72_vm2  ;;  %p151_p5 = por %p150_p4, %p149_p3 }
  0x2b   :  { %v48_v4 = vadd.s32 %v45_v3, %v44_v2 }
  0x2c   :  { %p152_p6 = pnand %p151_p5, %p145_p2 }
  0x2d   :  { %v49_v8 = vand.u32 7, %v48_v4 }
  0x2f   :  { %vm50_vm0 = vcmp.lt.s32.totalorder %v49_v8, 2 }
  0x30   :  { %v51_v10 = vsel %vm50_vm0, %v39_v9, 0.0 }
  0x31   :  { %61 = vadd.xlane.f32.xlu0 %v51_v10 }
  0xb7   :  { %v53_v11 = vpop.xlane.xlu0 %52 }
  0xb8   :  { %v54_v12 = vrot.slane %v53_v11, 4 }
  0xba   :  { %v55_v13 = vadd.f32 %v54_v12, %v53_v11 }
  0xbc   :  { %v56_v15 = vrot.slane %v55_v13, 2 }
  0xbe   :  { %v62_v14 = vpop.xlane.xlu0 %61  ;;  %v57_v18 = vadd.f32 %v56_v15, %v55_v13 }
  0xbf   :  { %v63_v16 = vrot.slane %v62_v14, 4 }
  0xc0   :  { %v58_v20 = vrot.slane %v57_v18, 1 }
  0xc1   :  { %v64_v17 = vadd.f32 %v63_v16, %v62_v14 }
  0xc2   :  { %v59_v22 = vadd.f32 %v58_v20, %v57_v18 }
  0xc3   :  { %v65_v19 = vrot.slane %v64_v17, 2 }
  0xc4   :  { %93 = vpush %v59_v22 }
  0xc5   :  { %v66_v21 = vadd.f32 %v65_v19, %v64_v17 }
  0xc7   :  { %v67_v23 = vrot.slane %v66_v21, 1 }
  0xc9   :  { %v68_v24 = vadd.f32 %v67_v23, %v66_v21 }
  0xcb   :  { %95 = vpush %v68_v24 }
  0xf5   :  { %s94_s1 = spop %93 }
  0xfc   :  { %s96_s4 = spop %95 }
  0xfd   :  { %s70_s7 = sadd.f32 %s96_s4, %s94_s1 }
  0xff   :  { %v74_v25 = vstv %s70_s7 }
 0x100   :  { %v75_v26 = vsel %vm73_vm3, %v74_v25, 0.0 }
 0x101   :  { %76 = vst [vmem:[#allocation7] sm:$0xff] %v75_v26 }
 0x102   :  { %155 = shalt.err (!%p152_p6)
}
 0x103   :  { %s156_s11 = scalar_lea.hbm %s228_s2, 128 }
 0x104   :  { %p157_p7 = scmp.ne.s32.totalorder %s228_s2, %s156_s11  ;;  %p160_p8 = scmp.lt.u32.totalorder %s156_s11, %s228_s2 }
 0x106   :  { %p162_p9 = pnand %p160_p8, %p157_p7 }
 0x108   :  { %165 = shalt.err (!%p162_p9)
}
 0x109   :  { %86 = dma.vmem_to_hbm [thread:$0]  %s84_s6, 128, %s228_s2, [#allocation4]  }
 0x10a   :  { %170 = dma.done.wait [#allocation4], 128  }
 0x10b   :  { %171 = vsyncadd [#allocation4], 4294967168 }
 0x10c   :  { %90 = vsyncpa [#allocation3], 1 }
 0x10d   :  { %91 = vsyncpa [#allocation6], 1 }
 0x10e   :  { %92 = vsyncpa [#allocation4], 1 }

</bundles_post_ra>
